<compile_context>
chip_gen: v7x
topology: tpu7x:2x2x1
jax: 0.10.0
libtpu: 0.0.40
codegen_flags: <defaults>
</compile_context>

<pallas_src>
import functools

import jax
import jax.numpy as jnp
import numpy as np
from jax.experimental import pallas as pl
from jax.experimental.pallas import tpu as pltpu

LN_EPS = 1e-5  # PyTorch nn.LayerNorm default

_VMEM_SPEC = pl.BlockSpec(memory_space=pltpu.MemorySpace.VMEM)  # whole array, single-buffered
_SMEM_SPEC = pl.BlockSpec(memory_space=pltpu.MemorySpace.SMEM)  # tiny scalar


# ----------------------------------------------------------------------------
# Kernel 1 (one-shot): factored edge-learner MLP + row softmax -> adjacency
# Computed ONCE (grid-invariant), per the review, instead of per grid step.
# ----------------------------------------------------------------------------
def _edge_adj_kernel(ne_ref, w1s_ref, w1d_ref, b1_ref, w2_ref, b2_ref, adj_ref):
    ne = ne_ref[...].astype(jnp.float32)                                  # [C, D]
    s = jnp.dot(ne, w1s_ref[...], preferred_element_type=jnp.float32)     # [C, 4D]
    t = jnp.dot(ne, w1d_ref[...], preferred_element_type=jnp.float32)     # [C, 4D]
    # Factored pairwise MLP: h[i,j] = relu(ne[i] @ W1_src + ne[j] @ W1_dst + b1)
    hp = jnp.maximum(s[:, None, :] + t[None, :, :] + b1_ref[...], 0.0)    # [C, C, 4D]
    logits = jnp.sum(hp * w2_ref[...], axis=-1) + b2_ref[0, 0]            # [C, C]
    logits = logits - jnp.max(logits, axis=-1, keepdims=True)             # stable softmax
    e = jnp.exp(logits)
    adj_ref[...] = e / jnp.sum(e, axis=-1, keepdims=True)


def _edge_adjacency(params, d_model):
    D = d_model
    C = params["node_emb"].shape[0]
    # Split w1 [2D, 4D] into src/dst halves -> no [C*C, 2D] pair materialization.
    w1_src = params["w1"][:D]
    w1_dst = params["w1"][D:]
    return pl.pallas_call(
        _edge_adj_kernel,
        out_shape=jax.ShapeDtypeStruct((C, C), jnp.float32),
        in_specs=[_VMEM_SPEC, _VMEM_SPEC, _VMEM_SPEC, _VMEM_SPEC, _VMEM_SPEC,
                  _SMEM_SPEC],
        out_specs=_VMEM_SPEC,
    )(params["node_emb"], w1_src, w1_dst, params["b1"], params["w2"], params["b2"])


# ----------------------------------------------------------------------------
# Kernel 2 (streaming): patch-mean + L GCN layers + LayerNorm + ReLU + residual
# x / out blocks are lane-dense [TB, C*P*D]; all per-node ops are expressed as
# matmuls against small kron operators (no in-kernel reshape / transpose / tile).
# ----------------------------------------------------------------------------
def _gnn_stream_kernel(x_ref, pool_ref, agg_ref, wk_ref, bg_ref, seg_ref,
                       gam_ref, bet_ref, bcast_ref, o_ref, *, num_layers):
    # Patch mean as an MXU matmul: [TB, C*P*D] @ [C*P*D, C*D] -> [TB, C*D] (f32).
    h = jnp.dot(x_ref[...], pool_ref[...], preferred_element_type=jnp.float32)

    for l in range(num_layers):                 # static unroll (L = 2)
        # Aggregation with the plain learned adjacency (kron(adj^T, I_D)).
        m = jnp.dot(h, agg_ref[...], preferred_element_type=jnp.float32)
        # Per-node transform: kron(I_C, W_l) + tiled bias.
        z = jnp.dot(m, wk_ref[l], preferred_element_type=jnp.float32) + bg_ref[l]
        # LayerNorm over each D-lane segment via the segment-mean operator.
        mu = jnp.dot(z, seg_ref[...], preferred_element_type=jnp.float32)
        zc = z - mu
        var = jnp.dot(zc * zc, seg_ref[...], preferred_element_type=jnp.float32)
        h = jnp.maximum(zc * jax.lax.rsqrt(var + LN_EPS) * gam_ref[l] + bet_ref[l],
                        0.0)

    # Broadcast over patches as a matmul, then residual add (re-read x_ref,
    # add in the activation dtype -> no full-tile f32 copy kept live).
    res = jnp.dot(h, bcast_ref[...], preferred_element_type=jnp.float32)
    o_ref[...] = x_ref[...] + res.astype(o_ref.dtype)


# ----------------------------------------------------------------------------
# Wrapper
# ----------------------------------------------------------------------------
def _vmem_capacity_bytes():
    try:
        return int(pltpu.get_tpu_info().vmem_capacity_bytes)
    except Exception:
        return 64 << 20     # v7x per-core physical VMEM; conservative fallback


def _choose_batch_tile(batch, row_elems, itemsize, weight_bytes, budget_bytes,
                       max_tile_bytes=4 << 20):
    """Largest batch tile whose FULL working set fits the VMEM budget:
    2x double-buffered input + output blocks + f32 temporaries + resident
    operator matrices (per the review, not just the x tile)."""
    def live_bytes(tb):
        io = 4 * tb * row_elems * itemsize     # 2x double-buffered in + out blocks
        f32_tmp = 2 * tb * row_elems * 4       # broadcast/residual temp + headroom
        return io + f32_tmp + weight_bytes

    cands = [tb for tb in range(1, batch + 1)
             if batch % tb == 0 and (tb % 8 == 0 or tb == batch)]  # (8,128) rule
    fits = [tb for tb in cands
            if live_bytes(tb) <= budget_bytes
            and tb * row_elems * itemsize <= max_tile_bytes]
    return max(fits) if fits else min(cands)


def graph_neural_network_forward(x, params, n_vars):
    """x: [B*C, num_patches, d_model] -> [B*C, num_patches, d_model]."""
    B_C, P, D = x.shape
    C = n_vars
    B = B_C // C
    L = params["wg"].shape[0]
    CD, CPD = C * D, C * P * D

    # ---- grid-invariant adjacency, computed once ----------------------------
    adj = _edge_adjacency(params, D)                                  # [C, C] f32

    # ---- lane-dense GCN operators (wrapper-side layout plumbing) ------------
    # TODO(synk): these kron operators scale as (C*D)^2; for large node counts
    # switch the aggregation to a per-batch dot_general on the [C, C] adjacency.
    eye_c = jnp.eye(C, dtype=jnp.float32)
    eye_d = jnp.eye(D, dtype=jnp.float32)
    pool = (jnp.kron(eye_c, jnp.tile(eye_d, (P, 1))) / P).astype(x.dtype)   # [CPD, CD]
    bcast = jnp.kron(eye_c, jnp.tile(eye_d, (1, P)))                        # [CD, CPD]
    aggm = jnp.kron(adj.T, eye_d)                                           # [CD, CD]
    segm = jnp.kron(eye_c, jnp.full((D, D), 1.0 / D, jnp.float32))          # [CD, CD]
    wk = jnp.stack([jnp.kron(eye_c, params["wg"][l].astype(jnp.float32))
                    for l in range(L)])                                     # [L, CD, CD]
    bgt = jnp.tile(params["bg"], (1, C))[:, None, :].astype(jnp.float32)    # [L, 1, CD]
    gmt = jnp.tile(params["gamma"], (1, C))[:, None, :].astype(jnp.float32)
    btt = jnp.tile(params["beta"], (1, C))[:, None, :].astype(jnp.float32)

    weight_bytes = sum(int(a.size) * a.dtype.itemsize
                       for a in (pool, bcast, aggm, segm, wk, bgt, gmt, btt))

    # ---- generation-aware VMEM budgeting -------------------------------------
    vmem_cap = _vmem_capacity_bytes()
    budget = (vmem_cap * 6) // 10                 # leave headroom for compiler scratch
    TB = _choose_batch_tile(B, CPD, x.dtype.itemsize, weight_bytes, budget)
    tile_live = 4 * TB * CPD * x.dtype.itemsize + 2 * TB * CPD * 4 + weight_bytes
    vmem_limit = int(max(32 << 20, min(vmem_cap - (4 << 20), 2 * tile_live)))

    # ---- lane-dense streaming view: [B, C*P*D] (last dim multiple of 128) ----
    x2 = x.reshape(B, CPD)

    out2 = pl.pallas_call(
        functools.partial(_gnn_stream_kernel, num_layers=L),
        out_shape=jax.ShapeDtypeStruct((B, CPD), x.dtype),
        grid=(B // TB,),
        in_specs=[
            pl.BlockSpec((TB, CPD), lambda b: (b, 0)),   # x block (pipelined)
            _VMEM_SPEC,   # pool  [CPD, CD]
            _VMEM_SPEC,   # aggm  [CD, CD]   kron(adj^T, I_D)
            _VMEM_SPEC,   # wk    [L, CD, CD] kron(I_C, W_l)
            _VMEM_SPEC,   # bgt   [L, 1, CD]
            _VMEM_SPEC,   # segm  [CD, CD]   per-node mean operator
            _VMEM_SPEC,   # gmt   [L, 1, CD]
            _VMEM_SPEC,   # btt   [L, 1, CD]
            _VMEM_SPEC,   # bcast [CD, CPD]
        ],
        out_specs=pl.BlockSpec((TB, CPD), lambda b: (b, 0)),
        # TODO(synk): on v7x, pltpu.CORE_PARALLEL here splits the batch loop
        # across both TensorCores; "parallel" kept for cross-generation portability.
        compiler_params=pltpu.CompilerParams(
            dimension_semantics=("parallel",),
            vmem_limit_bytes=vmem_limit),
    )(x2, pool, aggm, wk, bgt, segm, gmt, btt, bcast)

    return out2.reshape(B_C, P, D)


# ----------------------------------------------------------------------------
# Deterministic parameter init (shapes per the module's __init__)
# ----------------------------------------------------------------------------
def init_params(key, d_model, num_nodes, gnn_layers):
    D = d_model
    ks = jax.random.split(key, 5)
    return {
        "node_emb": jax.random.normal(ks[0], (num_nodes, D), jnp.float32),
        "w1": jax.random.normal(ks[1], (2 * D, 4 * D), jnp.float32) / np.sqrt(2 * D),
        "b1": jnp.zeros((1, 4 * D), jnp.float32),
        "w2": jax.random.normal(ks[2], (1, 4 * D), jnp.float32) / np.sqrt(4 * D),
        "b2": jnp.zeros((1, 1), jnp.float32),
        "wg": jax.random.normal(ks[3], (gnn_layers, D, D), jnp.float32) / np.sqrt(D),
        "bg": 0.02 * jax.random.normal(ks[4], (gnn_layers, D), jnp.float32),
        "gamma": jnp.ones((gnn_layers, D), jnp.float32),   # nn.LayerNorm default
        "beta": jnp.zeros((gnn_layers, D), jnp.float32),
    }


# ----------------------------------------------------------------------------
# Pure-JAX reference (same math) for correctness check
# ----------------------------------------------------------------------------
def ref_forward(x, params, n_vars):
    B_C, P, D = x.shape
    C = n_vars
    B = B_C // C
    node_emb = params["node_emb"]
    src = jnp.broadcast_to(node_emb[:, None, :], (C, C, D))
    dst = jnp.broadcast_to(node_emb[None, :, :], (C, C, D))
    pair = jnp.concatenate([src, dst], axis=-1)                       # [C, C, 2D]
    h = jnp.maximum(pair @ params["w1"] + params["b1"][0], 0.0)
    logits = jnp.sum(h * params["w2"][0], axis=-1) + params["b2"][0, 0]
    adj = jax.nn.softmax(logits, axis=-1)                             # [C, C]
    xf = x.reshape(B, C, P, D)
    hf = xf.mean(axis=2)                                              # [B, C, D]
    for l in range(params["wg"].shape[0]):
        m = jnp.einsum("ij,bjd->bid", adj, hf)
        z = m @ params["wg"][l] + params["bg"][l]
        mu = z.mean(-1, keepdims=True)
        var = ((z - mu) ** 2).mean(-1, keepdims=True)
        z = (z - mu) / jnp.sqrt(var + LN_EPS)
        z = z * params["gamma"][l] + params["beta"][l]
        hf = jnp.maximum(z, 0.0)
    return (xf + hf[:, :, None, :]).reshape(B_C, P, D)


if __name__ == "__main__":
    B, C, P, D = 2, 4, 8, 32          # batch, channels(=num_nodes), patches, d_model
    L = 2                             # gnn_layers
    key = jax.random.PRNGKey(0)
    kx, kp = jax.random.split(key)

    x = jax.random.normal(kx, (B * C, P, D), jnp.float32)
    params = init_params(kp, d_model=D, num_nodes=C, gnn_layers=L)

    # ---- f32 path: tight check against the straightforward JAX reference ----
    out = jax.block_until_ready(graph_neural_network_forward(x, params, n_vars=C))
    assert out.shape == (B * C, P, D)
    with jax.default_matmul_precision("float32"):     # exact-f32 reference matmuls
        ref = jax.block_until_ready(ref_forward(x, params, n_vars=C))
    np.testing.assert_allclose(np.asarray(out), np.asarray(ref), rtol=2e-4, atol=2e-4)

    # ---- bf16 activation path (halved HBM traffic); bf16-level tolerance ----
    xb = x.astype(jnp.bfloat16)
    out_b = jax.block_until_ready(graph_neural_network_forward(xb, params, n_vars=C))
    with jax.default_matmul_precision("float32"):
        ref_b = jax.block_until_ready(
            ref_forward(xb.astype(jnp.float32), params, n_vars=C))
    np.testing.assert_allclose(np.asarray(out_b, dtype=np.float32),
                               np.asarray(ref_b), rtol=2e-2, atol=2e-2)

    print("KERNEL_OK")
</pallas_src>

<mosaic_0001>
module attributes {stable_mosaic.version = 11 : i64} {
  func.func @_edge_adj_kernel(%arg0: memref<4x32xf32, #tpu.memory_space<vmem>>, %arg1: memref<32x128xf32, #tpu.memory_space<vmem>>, %arg2: memref<32x128xf32, #tpu.memory_space<vmem>>, %arg3: memref<1x128xf32, #tpu.memory_space<vmem>>, %arg4: memref<1x128xf32, #tpu.memory_space<vmem>>, %arg5: memref<1x1xf32, #tpu.memory_space<smem>>, %arg6: memref<4x4xf32, #tpu.memory_space<vmem>>) attributes {dimension_semantics = [], scalar_prefetch = 0 : i64, scratch_operands = 0 : i64, tpu.core_type = #tpu.core_type<tc>} {
    %c0 = arith.constant 0 : index
    %c0_0 = arith.constant 0 : index
    %0 = vector.load %arg0[%c0, %c0_0] : memref<4x32xf32, #tpu.memory_space<vmem>>, vector<4x32xf32>
    %c0_1 = arith.constant 0 : index
    %c0_2 = arith.constant 0 : index
    %1 = vector.load %arg1[%c0_1, %c0_2] : memref<32x128xf32, #tpu.memory_space<vmem>>, vector<32x128xf32>
    %cst = arith.constant dense<0.000000e+00> : vector<4x128xf32>
    %2 = tpu.matmul %0, %1, %cst {dimension_numbers = #tpu.dot_dimension_numbers<[1], [0], [0], [1], [0, 0, 1, 1], [], []>} : vector<4x32xf32>, vector<32x128xf32>, vector<4x128xf32> -> vector<4x128xf32>
    %c0_3 = arith.constant 0 : index
    %c0_4 = arith.constant 0 : index
    %3 = vector.load %arg2[%c0_3, %c0_4] : memref<32x128xf32, #tpu.memory_space<vmem>>, vector<32x128xf32>
    %cst_5 = arith.constant dense<0.000000e+00> : vector<4x128xf32>
    %4 = tpu.matmul %0, %3, %cst_5 {dimension_numbers = #tpu.dot_dimension_numbers<[1], [0], [0], [1], [0, 0, 1, 1], [], []>} : vector<4x32xf32>, vector<32x128xf32>, vector<4x128xf32> -> vector<4x128xf32>
    %5 = vector.shape_cast %2 : vector<4x128xf32> to vector<4x1x128xf32>
    %6 = vector.shape_cast %4 : vector<4x128xf32> to vector<1x4x128xf32>
    %7 = vector.broadcast %5 : vector<4x1x128xf32> to vector<4x4x128xf32>
    %8 = vector.broadcast %6 : vector<1x4x128xf32> to vector<4x4x128xf32>
    %9 = arith.addf %7, %8 : vector<4x4x128xf32>
    %c0_6 = arith.constant 0 : index
    %c0_7 = arith.constant 0 : index
    %10 = vector.load %arg3[%c0_6, %c0_7] : memref<1x128xf32, #tpu.memory_space<vmem>>, vector<1x128xf32>
    %11 = vector.shape_cast %10 : vector<1x128xf32> to vector<1x1x128xf32>
    %12 = vector.broadcast %11 : vector<1x1x128xf32> to vector<4x4x128xf32>
    %13 = arith.addf %9, %12 : vector<4x4x128xf32>
    %cst_8 = arith.constant 0.000000e+00 : f32
    %14 = vector.broadcast %cst_8 : f32 to vector<4x4x128xf32>
    %15 = arith.maximumf %13, %14 : vector<4x4x128xf32>
    %c0_9 = arith.constant 0 : index
    %c0_10 = arith.constant 0 : index
    %16 = vector.load %arg4[%c0_9, %c0_10] : memref<1x128xf32, #tpu.memory_space<vmem>>, vector<1x128xf32>
    %17 = vector.shape_cast %16 : vector<1x128xf32> to vector<1x1x128xf32>
    %18 = vector.broadcast %17 : vector<1x1x128xf32> to vector<4x4x128xf32>
    %19 = arith.mulf %15, %18 : vector<4x4x128xf32>
    %cst_11 = arith.constant dense<0.000000e+00> : vector<4x4xf32>
    %20 = vector.multi_reduction <add>, %19, %cst_11 [2] : vector<4x4x128xf32> to vector<4x4xf32>
    %c0_12 = arith.constant 0 : index
    %c0_13 = arith.constant 0 : index
    %21 = memref.load %arg5[%c0_12, %c0_13] : memref<1x1xf32, #tpu.memory_space<smem>>
    %22 = vector.broadcast %21 : f32 to vector<4x4xf32>
    %23 = arith.addf %20, %22 : vector<4x4xf32>
    %cst_14 = arith.constant dense<0xFF800000> : vector<4xf32>
    %24 = vector.multi_reduction <maximumf>, %23, %cst_14 [1] : vector<4x4xf32> to vector<4xf32>
    %25 = vector.shape_cast %24 : vector<4xf32> to vector<4x1xf32>
    %26 = vector.broadcast %25 : vector<4x1xf32> to vector<4x4xf32>
    %27 = arith.subf %23, %26 : vector<4x4xf32>
    %28 = math.exp %27 : vector<4x4xf32>
    %cst_15 = arith.constant dense<0.000000e+00> : vector<4xf32>
    %29 = vector.multi_reduction <add>, %28, %cst_15 [1] : vector<4x4xf32> to vector<4xf32>
    %30 = vector.shape_cast %29 : vector<4xf32> to vector<4x1xf32>
    %31 = vector.broadcast %30 : vector<4x1xf32> to vector<4x4xf32>
    %32 = arith.divf %28, %31 : vector<4x4xf32>
    %c0_16 = arith.constant 0 : index
    %c0_17 = arith.constant 0 : index
    %33 = vector.load %arg6[%c0_16, %c0_17] : memref<4x4xf32, #tpu.memory_space<vmem>>, vector<4x4xf32>
    tpu.vector_store %arg6[%c0_16, %c0_17], %32 {strides = array<i32>} : memref<4x4xf32, #tpu.memory_space<vmem>>, vector<4x4xf32>,
    return
  }
}

</mosaic_0001>

<bundles_post_ra>
// kernel: tpu_custom_call.1
= control target key start
LH: loop header
LB: loop body
LE: loop exit
PB: predicated region body
PF: predicated region fallthrough
CT: control target
= control target key end

     0   :  { %12 = vsyncpa [#allocation4], 0  ;;  %s820_s0 = inlined_call_operand.hbm [shape: f32[4,32], index: 0, kind: input, shape index: {}]   ;;  %s821_s1 = inlined_call_operand.hbm [shape: f32[32,128], index: 1, kind: input, shape index: {}]   ;;  %s822_s2 = inlined_call_operand.hbm [shape: f32[32,128], index: 2, kind: input, shape index: {}]   ;;  %s823_s3 = inlined_call_operand.vmem [shape: f32[1,128], index: 3, kind: input, shape index: {}]   ;;  %s824_s4 = inlined_call_operand.vmem [shape: f32[1,128], index: 4, kind: input, shape index: {}]   ;;  %s825_s5 = inlined_call_operand.<no memory space> [shape: f32[1,1], index: 5, kind: input, shape index: {}]   ;;  %s826_s6 = inlined_call_operand.hbm [shape: f32[4,4], index: 6, kind: output, shape index: {}]  }
   0x1   :  { %13 = vsyncpa [#allocation7], 0 }
   0x2   :  { %14 = vsyncpa [#allocation5], 0  ;;  %s669_s21 = smov [#allocation6]   ;;  %s575_s25 = scalar_lea.hbm %s821_s1, 512 }
   0x3   :  { %s30_s22 = sshll.u32 %s669_s21, 4  ;;  %p576_p0 = scmp.ne.s32.totalorder %s821_s1, %s575_s25  ;;  %s31_s22 = int_to_ptr.vmem [resolvable:$true] %s30_s22 }
   0x4   :  { %p579_p1 = scmp.lt.u32.totalorder %s575_s25, %s821_s1 }
   0x6   :  { %p581_p2 = pnand %p579_p1, %p576_p0 }
   0x8   :  { %584 = shalt.err (!%p581_p2)
}
   0x9   :  { %s585_s30 = scalar_lea.vmem %s31_s22, 512  ;;  %p590_p4 = scmp.lt.s32.totalorder %s31_s22, %s31_s22 }
   0xa   :  { %p586_p3 = scmp.ne.s32.totalorder %s31_s22, %s585_s30  ;;  %p591_p5 = scmp.lt.s32.totalorder %s585_s30, %s585_s30 }
   0xc   :  { %p592_p6 = por %p591_p5, %p590_p4 }
   0xe   :  { %p593_p7 = pnand %p592_p6, %p586_p3 }
  0x10   :  { %596 = shalt.err (!%p593_p7)
}
  0x11   :  { %s670_s7 = smov 128   ;;  %s671_s8 = smov 8  }
  0x12   :  { %36 = dma.hbm_to_vmem [thread:$0]  %s821_s1, 512, %s31_s22, [#allocation7], %s670_s7, %s670_s7, %s671_s8  }
  0x13   :  { %s672_s11 = smov [#allocation3]   ;;  %s673_s13 = smov [#allocation8]  }
  0x14   :  { %s21_s12 = sshll.u32 %s672_s11, 4  ;;  %s42_s14 = sshll.u32 %s673_s13, 4  ;;  %s22_s12 = int_to_ptr.vmem [resolvable:$true] %s21_s12  ;;  %s43_s14 = int_to_ptr.vmem [resolvable:$true] %s42_s14 }
  0x15   :  { %s597_s17 = scalar_lea.hbm %s820_s0, 64 }
  0x16   :  { %p598_p8 = scmp.ne.s32.totalorder %s820_s0, %s597_s17  ;;  %p601_p9 = scmp.lt.u32.totalorder %s597_s17, %s820_s0 }
  0x18   :  { %p603_p10 = pnand %p601_p9, %p598_p8 }
  0x1a   :  { %606 = shalt.err (!%p603_p10)
}
  0x1b   :  { %s607_s1 = scalar_lea.vmem %s22_s12, 64  ;;  %p612_p12 = scmp.lt.s32.totalorder %s22_s12, %s22_s12 }
  0x1c   :  { %p608_p11 = scmp.ne.s32.totalorder %s22_s12, %s607_s1  ;;  %p613_p13 = scmp.lt.s32.totalorder %s607_s1, %s607_s1 }
  0x1e   :  { %p614_p0 = por %p613_p13, %p612_p12 }
  0x20   :  { %p615_p1 = pnand %p614_p0, %p608_p11 }
  0x22   :  { %618 = shalt.err (!%p615_p1)
}
  0x23   :  { %24 = dma.hbm_to_vmem [thread:$0]  %s820_s0, 64, %s22_s12, [#allocation4]  }
  0x24   :  { %s619_s26 = scalar_lea.hbm %s822_s2, 512 }
  0x25   :  { %p620_p2 = scmp.ne.s32.totalorder %s822_s2, %s619_s26  ;;  %p623_p3 = scmp.lt.u32.totalorder %s619_s26, %s822_s2 }
  0x27   :  { %p625_p4 = pnand %p623_p3, %p620_p2 }
  0x29   :  { %628 = shalt.err (!%p625_p4)
}
  0x2a   :  { %s629_s9 = scalar_lea.vmem %s43_s14, 512  ;;  %p634_p6 = scmp.lt.s32.totalorder %s43_s14, %s43_s14 }
  0x2b   :  { %p630_p5 = scmp.ne.s32.totalorder %s43_s14, %s629_s9  ;;  %p635_p7 = scmp.lt.s32.totalorder %s629_s9, %s629_s9 }
  0x2d   :  { %p636_p8 = por %p635_p7, %p634_p6 }
  0x2f   :  { %p637_p9 = pnand %p636_p8, %p630_p5 }
  0x31   :  { %640 = shalt.err (!%p637_p9)
}
  0x32   :  { %48 = dma.hbm_to_vmem [thread:$0]  %s822_s2, 512, %s43_s14, [#allocation7], %s670_s7, %s670_s7, %s671_s8  }
  0x33   :  { %663 = dma.done.wait [#allocation4], 64  }
  0x34   :  { %664 = vsyncadd [#allocation4], 4294967232 }
  0x35   :  { %665 = dma.done.wait [#allocation7], 1024  }
  0x36   :  { %666 = vsyncadd [#allocation7], 4294966272  ;;  %v674_v0 = vmov 0.0|0.0   ;;  %vm675_vm0 = vmmov 0   ;;  %v676_v1 = vmov 0.0   ;;  %v65_v2 = vld [vmem:[#allocation6] sm:$0xff]  ;;  %v221_v17 = vlaneseq }
  0x37   :  { %534 = vmatprep.subr.bf16.mxu0 %v674_v0  ;;  %540 = vmatprep.subr.bf16.mxu1 %v674_v0  ;;  %v66_v3 = vld [vmem:[#allocation6 + $0x8] sm:$0xff]  ;;  %v67_v4 = vld [vmem:[#allocation6 + $0x10] sm:$0xff]  ;;  %v68_v6 = vld [vmem:[#allocation6 + $0x18] sm:$0xff]  ;;  %vm69_vm1 = vcmask 261120   ;;  %v677_v15 = vmov 1966171168   ;;  %v306_v59 = vstv %s825_s5 }
  0x38   :  { %520 = vmatprep.mubr.msk.f32.mxu0 %vm675_vm0, %v676_v1  ;;  %531 = vmatprep.mubr.msk.f32.mxu1 %vm675_vm0, %v676_v1  ;;  %v535_v5 = vpack.c.bf16 %v66_v3, %v65_v2  ;;  %v143_v7 = vld [vmem:[#allocation8] sm:$0xff]  ;;  %v144_v8 = vld [vmem:[#allocation8 + $0x8] sm:$0xff]  ;;  %v145_v10 = vld [vmem:[#allocation8 + $0x10] sm:$0xff]  ;;  %v538_v12 = vpack.c.bf16 %v68_v6, %v67_v4  ;;  %v219_v16 = vunpack.c.l.s4 %v677_v15  ;;  %v757_v19 = vshrl.u32 %v221_v17, 7  ;;  %s679_s5 = smov [#allocation9]  }
  0x39   :  { %v541_v9 = vpack.c.bf16 %v144_v8, %v143_v7  ;;  %v146_v11 = vld [vmem:[#allocation8 + $0x18] sm:$0xff]  ;;  %vm292_vm2 = vcmask 1043456   ;;  %v316_v58 = vand.u32 127, %v221_v17  ;;  %vm333_vm3 = vcmask 1041409   ;;  %s488_s12 = sshll.u32 %s679_s5, 4  ;;  %s489_s12 = int_to_ptr.vmem [resolvable:$true] %s488_s12 }
  0x3a   :  { %536 = vmatpush3.bf16.msra.mxu0 %v535_v5  ;;  %v544_v13 = vpack.c.bf16 %v146_v11, %v145_v10  ;;  %v64_v14 = vld [vmem:[#allocation3] sm:$0xf]  ;;  %v220_v18 = vunpack.c.0.s8 %v219_v16  ;;  %v761_v23 = vsub.s32 0, %v757_v19  ;;  %vm335_vm4 = vcmask 1042434   ;;  %s641_s13 = scalar_lea.vmem %s489_s12, 64  ;;  %p646_p11 = scmp.lt.s32.totalorder %s489_s12, %s489_s12 }
  0x3b   :  { %537 = vmatprep.subr.bf16.mxu0 %v674_v0  ;;  %542 = vmatpush3.bf16.msra.mxu1 %v541_v9  ;;  %v500_v32 = vld [vmem:[%s823_s3] ss:$0 sm:$0xff]  ;;  %v777_v62 = vsub.s32 %v316_v58, %v757_v19  ;;  %vm337_vm5 = vcmask 1043459   ;;  %vm340_vm6 = vcmask 27648   ;;  %v355_v15 = vsub.s32 2, %v757_v19  ;;  %p642_p10 = scmp.ne.s32.totalorder %s489_s12, %s641_s13  ;;  %p647_p12 = scmp.lt.s32.totalorder %s641_s13, %s641_s13 }
  0x3c   :  { %543 = vmatprep.subr.bf16.mxu1 %v674_v0  ;;  %v223_v20 = vsub.s32 %v220_v18, %v757_v19  ;;  %v501_v41 = vld [vmem:[%s824_s4] ss:$0 sm:$0xff]  ;;  %v359_v16 = vsub.s32 3, %v757_v19 }
  0x3d   :  { %p648_p13 = por %p647_p12, %p646_p11 }
  0x3e   :  { %539 = vmatpush3.bf16.msra.mxu0 %v538_v12 }
  0x3f   :  { %545 = vmatpush3.bf16.msra.mxu1 %v544_v13  ;;  %v678_v13 = vmov 0   ;;  %p649_p0 = pnand %p648_p13, %p642_p10 }
  0x40   :  { %558 = vset.pattern.permute.xlu0 %v678_v13  ;;  %557 = vset.pattern.permute.xlu1 %v678_v13 }
  0x41   :  { %521 = vmatmul.mubr.msk.f32.vlgmr.msra.gmra.mrb[0].mxu0 %vm69_vm1, %v64_v14 }
  0x42   :  { %532 = vmatmul.mubr.msk.f32.vlgmr.msra.gmra.mrb[0].mxu1 %vm69_vm1, %v64_v14  ;;  %v351_v14 = vsub.s32 1, %v757_v19 }
 0x114   :  { %v139_v21 = vpop.f32.mrb[0].mxu0 }
 0x115   :  { %v224_v22 = vrot.slane %v139_v21, %v223_v20  ;;  %v522_v24 = vpop.f32.mrb[1].mxu0  ;;  %v213_v25 = vpop.f32.mrb[0].mxu1 }
 0x116   :  { %v533_v26 = vpop.f32.mrb[1].mxu1 }
 0x117   :  { %v225_v27 = vcombine.high %v224_v22, %v224_v22  ;;  %v232_v28 = vrot.slane %v224_v22, %v223_v20 }
 0x119   :  { %v239_v29 = vrot.slane %v225_v27, %v223_v20  ;;  %v240_v30 = vcombine.high %v232_v28, %v232_v28  ;;  %v245_v31 = vrot.slane %v232_v28, %v761_v23 }
 0x11b   :  { %v241_v33 = vcombine.high %v239_v29, %v239_v29  ;;  %v249_v34 = vrot.slane %v239_v29, %v761_v23  ;;  %v253_v35 = vrot.slane %v240_v30, %v761_v23  ;;  %v262_v36 = vadd.f32 %v245_v31, %v213_v25 }
 0x11d   :  { %v257_v37 = vrot.slane %v241_v33, %v761_v23  ;;  %v263_v38 = vadd.f32 %v249_v34, %v213_v25  ;;  %v264_v39 = vadd.f32 %v253_v35, %v213_v25  ;;  %v273_v40 = vadd.f32 %v500_v32, %v262_v36 }
 0x11f   :  { %v265_v42 = vadd.f32 %v257_v37, %v213_v25  ;;  %v277_v43 = vmax.f32 %v273_v40, 0.0  ;;  %v275_v44 = vadd.f32 %v500_v32, %v264_v39  ;;  %v274_v45 = vadd.f32 %v500_v32, %v263_v38 }
 0x121   :  { %v288_v46 = vmul.f32 %v501_v41, %v277_v43  ;;  %v279_v47 = vmax.f32 %v275_v44, 0.0  ;;  %v278_v48 = vmax.f32 %v274_v45, 0.0  ;;  %v276_v49 = vadd.f32 %v500_v32, %v265_v42 }
 0x123   :  { %v293_v50 = vsel %vm292_vm2, %v288_v46, 0.0  ;;  %v290_v51 = vmul.f32 %v501_v41, %v279_v47  ;;  %v289_v52 = vmul.f32 %v501_v41, %v278_v48  ;;  %v280_v53 = vmax.f32 %v276_v49, 0.0 }
 0x124   :  { %294 = vadd.xlane.f32.xlu0 %v293_v50 }
 0x125   :  { %v299_v54 = vsel %vm292_vm2, %v290_v51, 0.0  ;;  %v291_v55 = vmul.f32 %v501_v41, %v280_v53  ;;  %v296_v56 = vsel %vm292_vm2, %v289_v52, 0.0 }
 0x126   :  { %300 = vadd.xlane.f32.xlu1 %v299_v54 }
 0x127   :  { %v302_v57 = vsel %vm292_vm2, %v291_v55, 0.0 }
 0x128   :  { %297 = vadd.xlane.f32.xlu0 %v296_v56 }
 0x12a   :  { %303 = vadd.xlane.f32.xlu1 %v302_v57 }
 0x1b1   :  { %v295_v60 = vpop.xlane.xlu0 %294 }
 0x1b2   :  { %v307_v63 = vadd.f32 %v306_v59, %v295_v60 }
 0x1b3   :  { %v301_v61 = vpop.xlane.xlu1 %300 }
 0x1b4   :  { %v309_v0 = vadd.f32 %v306_v59, %v301_v61  ;;  %v320_v4 = vrot.slane %v307_v63, %v777_v62 }
 0x1b5   :  { %v298_v1 = vpop.xlane.xlu0 %297 }
 0x1b6   :  { %v308_v2 = vadd.f32 %v306_v59, %v298_v1  ;;  %v328_v7 = vrot.slane %v309_v0, %v777_v62 }
 0x1b7   :  { %v304_v3 = vpop.xlane.xlu1 %303 }
 0x1b8   :  { %v324_v5 = vrot.slane %v308_v2, %v777_v62  ;;  %v310_v6 = vadd.f32 %v306_v59, %v304_v3 }
 0x1ba   :  { %v332_v8 = vrot.slane %v310_v6, %v777_v62  ;;  %v334_v9 = vsel %vm333_vm3, %v324_v5, %v320_v4 }
 0x1bb   :  { %v336_v10 = vsel %vm335_vm4, %v328_v7, %v334_v9 }
 0x1bc   :  { %v338_v11 = vsel %vm337_vm5, %v332_v8, %v336_v10 }
 0x1bd   :  { %v341_v12 = vsel %vm340_vm6, %v338_v11, -inf }
 0x1be   :  { %342 = vmax.xlane.f32.xlu0 %v341_v12 }
 0x24b   :  { %v343_v17 = vpop.xlane.xlu0 %342 }
 0x24c   :  { %v348_v18 = vrot.slane %v343_v17, %v761_v23  ;;  %v352_v20 = vrot.slane %v343_v17, %v351_v14  ;;  %v356_v21 = vrot.slane %v343_v17, %v355_v15  ;;  %v360_v22 = vrot.slane %v343_v17, %v359_v16 }
 0x24e   :  { %v365_v24 = vsub.f32 %v307_v63, %v348_v18  ;;  %v366_v25 = vsub.f32 %v308_v2, %v352_v20  ;;  %v367_v26 = vsub.f32 %v309_v0, %v356_v21  ;;  %v368_v29 = vsub.f32 %v310_v6, %v360_v22 }
 0x250   :  { %v369_v27 = vmul.f32 1.442695, %v365_v24  ;;  %v371_v28 = vmul.f32 1.442695, %v366_v25  ;;  %v373_v30 = vmul.f32 1.442695, %v367_v26 }
 0x251   :  { %v375_v31 = vmul.f32 1.442695, %v368_v29 }
 0x252   :  { %559 = vpow2.f32 %v369_v27 }
 0x253   :  { %561 = vpow2.f32 %v371_v28 }
 0x254   :  { %563 = vpow2.f32 %v373_v30 }
 0x255   :  { %565 = vpow2.f32 %v375_v31 }
 0x25c   :  { %v560_v32 = vpop.eup %559 }
 0x25d   :  { %v562_v19 = vpop.eup %561  ;;  %382 = vperm.xlu1 %557, %v560_v32  }
 0x25e   :  { %385 = vperm.xlu0 %558, %v562_v19   ;;  %v564_v33 = vpop.eup %563 }
 0x25f   :  { %v566_v34 = vpop.eup %565 }
 0x261   :  { %388 = vperm.xlu1 %557, %v564_v33  }
 0x265   :  { %391 = vperm.xlu1 %557, %v566_v34  }
 0x2dc   :  { %v383_v35 = vpop.permute.xlu1 %382 }
 0x2dd   :  { %v386_v36 = vpop.permute.xlu0 %385  ;;  %v396_v39 = vrot.slane %v383_v35, %v777_v62 }
 0x2de   :  { %v400_v38 = vrot.slane %v386_v36, %v777_v62 }
 0x2e0   :  { %v389_v37 = vpop.permute.xlu1 %388  ;;  %v409_v42 = vsel %vm333_vm3, %v400_v38, %v396_v39 }
 0x2e1   :  { %v404_v40 = vrot.slane %v389_v37, %v777_v62 }
 0x2e3   :  { %v410_v44 = vsel %vm335_vm4, %v404_v40, %v409_v42 }
 0x2e4   :  { %v392_v41 = vpop.permute.xlu1 %391 }
 0x2e5   :  { %v408_v43 = vrot.slane %v392_v41, %v777_v62 }
 0x2e7   :  { %v411_v45 = vsel %vm337_vm5, %v408_v43, %v410_v44 }
 0x2e8   :  { %v413_v46 = vsel %vm340_vm6, %v411_v45, 0.0 }
 0x2e9   :  { %414 = vadd.xlane.f32.xlu1 %v413_v46 }
 0x376   :  { %v415_v47 = vpop.xlane.xlu1 %414 }
 0x377   :  { %v420_v48 = vrot.slane %v415_v47, %v761_v23  ;;  %v424_v49 = vrot.slane %v415_v47, %v351_v14  ;;  %v428_v50 = vrot.slane %v415_v47, %v355_v15  ;;  %v432_v51 = vrot.slane %v415_v47, %v359_v16 }
 0x379   :  { %567 = vrcp.f32 %v420_v48 }
 0x37a   :  { %569 = vrcp.f32 %v424_v49 }
 0x37b   :  { %571 = vrcp.f32 %v428_v50 }
 0x37c   :  { %573 = vrcp.f32 %v432_v51 }
 0x383   :  { %v568_v52 = vpop.eup %567 }
 0x384   :  { %v438_v53 = vmul.f32 %v568_v52, %v560_v32  ;;  %v570_v54 = vpop.eup %569 }
 0x385   :  { %v440_v55 = vmul.f32 %v570_v54, %v562_v19  ;;  %v572_v56 = vpop.eup %571 }
 0x386   :  { %450 = vperm.xlu0 %558, %v438_v53   ;;  %v442_v57 = vmul.f32 %v572_v56, %v564_v33  ;;  %v574_v58 = vpop.eup %573 }
 0x387   :  { %v444_v59 = vmul.f32 %v574_v58, %v566_v34 }
 0x38a   :  { %453 = vperm.xlu0 %558, %v440_v55  }
 0x38e   :  { %456 = vperm.xlu0 %558, %v442_v57  }
 0x392   :  { %459 = vperm.xlu0 %558, %v444_v59  }
 0x405   :  { %v451_v23 = vpop.permute.xlu0 %450 }
 0x406   :  { %v464_v1 = vrot.slane %v451_v23, %v777_v62 }
 0x409   :  { %v454_v60 = vpop.permute.xlu0 %453 }
 0x40a   :  { %v468_v63 = vrot.slane %v454_v60, %v777_v62 }
 0x40c   :  { %v477_v3 = vsel %vm333_vm3, %v468_v63, %v464_v1 }
 0x40d   :  { %v457_v61 = vpop.permute.xlu0 %456 }
 0x40e   :  { %v472_v0 = vrot.slane %v457_v61, %v777_v62 }
 0x410   :  { %v478_v5 = vsel %vm335_vm4, %v472_v0, %v477_v3 }
 0x411   :  { %v460_v2 = vpop.permute.xlu0 %459 }
 0x412   :  { %v476_v4 = vrot.slane %v460_v2, %v777_v62 }
 0x414   :  { %v479_v6 = vsel %vm337_vm5, %v476_v4, %v478_v5 }
 0x415   :  { %481 = vst.msk [vmem:[#allocation9] sm:$0xf] %vm340_vm6, %v479_v6 }
 0x416   :  { %652 = shalt.err (!%p649_p0)
}
 0x417   :  { %s653_s16 = scalar_lea.hbm %s826_s6, 64 }
 0x418   :  { %p654_p1 = scmp.ne.s32.totalorder %s826_s6, %s653_s16  ;;  %p657_p2 = scmp.lt.u32.totalorder %s653_s16, %s826_s6 }
 0x41a   :  { %p659_p3 = pnand %p657_p2, %p654_p1 }
 0x41c   :  { %662 = shalt.err (!%p659_p3)
}
 0x41d   :  { %491 = dma.vmem_to_hbm [thread:$0]  %s489_s12, 64, %s826_s6, [#allocation5]  }
 0x41e   :  { %667 = dma.done.wait [#allocation5], 64  }
 0x41f   :  { %668 = vsyncadd [#allocation5], 4294967232 }
 0x420   :  { %495 = vsyncpa [#allocation4], 1 }
 0x421   :  { %496 = vsyncpa [#allocation7], 1 }
 0x422   :  { %497 = vsyncpa [#allocation5], 1 }

</bundles_post_ra>
